<compile_context>
chip_gen: v6e
topology: v6e:2x2x1
jax: 0.10.0
libtpu: 0.0.40
codegen_flags: <defaults>
</compile_context>

<pallas_src>
import jax
import jax.numpy as jnp
from jax.experimental import pallas as pl
from jax.experimental.pallas import tpu as pltpu

INPUT_DIM = 21
K_CONV = 3
S_CONV = 1
K_POOL = 2
S_POOL = 2
C_CONV = 128
OUT_CONV = (INPUT_DIM - K_CONV) // S_CONV + 1      # 19
OUT_POOL = (OUT_CONV - K_POOL) // S_POOL + 1       # 9
H_FC1 = 256
N_CLASSES = 2
PAD_OUT = 128                                      # lane-dense padded fc2 width
CONV_COLS = OUT_CONV * C_CONV                      # 2432
POOL_COLS = OUT_POOL * C_CONV                      # 1152


def _round_up(n, m):
    return ((n + m - 1) // m) * m


def cnn_kernel(x_ref, cw_ref, cb_ref, w1_ref, b1_ref, w2_ref, b2_ref, out_ref):
    # x_ref : (TB, 21) bf16          cw_ref: (21, 2432) bf16   cb_ref: (1, 2432) f32
    # w1_ref: (1152, 256) bf16       b1_ref: (1, 256) f32
    # w2_ref: (256, 128) bf16        b2_ref: (1, 128) f32      out_ref: (TB, 128) f32
    x = x_ref[...]

    # Conv1d(1->128, k=3) for all 19 positions as ONE Toeplitz matmul, f32 acc.
    y = jnp.dot(x, cw_ref[...], preferred_element_type=jnp.float32) + cb_ref[...]
    y = jnp.maximum(y, 0.0)                                     # ReLU (f32, VPU)

    # MaxPool1d(k=2, s=2): 9 elementwise maxima of 128-lane-aligned slices,
    # concatenated t-major -> (TB, 1152).  Slices are free views.
    pooled = [
        jnp.maximum(y[:, (2 * tp) * C_CONV:(2 * tp + 1) * C_CONV],
                    y[:, (2 * tp + 1) * C_CONV:(2 * tp + 2) * C_CONV])
        for tp in range(OUT_POOL)
    ]
    p = jnp.concatenate(pooled, axis=-1)                        # (TB, 1152) f32

    # fc1 as a single K=1152, N=256 matmul (t-major repacked weight), then ReLU.
    h = jnp.dot(p.astype(jnp.bfloat16), w1_ref[...],
                preferred_element_type=jnp.float32) + b1_ref[...]
    h = jnp.maximum(h, 0.0)                                     # (TB, 256) f32

    # fc2, padded to 128 lanes so the store is a full-width vst.
    out_ref[...] = jnp.dot(h.astype(jnp.bfloat16), w2_ref[...],
                           preferred_element_type=jnp.float32) + b2_ref[...]


def pack_params(conv_w, conv_b, fc1_w, fc1_b, fc2_w, fc2_b):
    """One-time repacking of PyTorch-layout params (hoisted out of the forward)."""
    # Toeplitz conv weight: column index = t*128 + c, rows = input positions.
    cw = conv_w[:, 0, :]                                          # (128, 3)
    toep = jnp.zeros((INPUT_DIM, OUT_CONV, C_CONV), jnp.float32)
    for t in range(OUT_CONV):
        toep = toep.at[t:t + K_CONV, t, :].set(cw.T)              # (3, 128)
    cw_toep = toep.reshape(INPUT_DIM, CONV_COLS).astype(jnp.bfloat16)
    cb_tiled = jnp.tile(conv_b, (OUT_CONV,)).reshape(1, CONV_COLS)  # f32

    # PyTorch flatten of (B, 128, 9) uses column c*9 + t; repack fc1 weight to
    # t-major rows (t*128 + c) so it matches the kernel's pooled concat order.
    w1 = (fc1_w.reshape(H_FC1, C_CONV, OUT_POOL)
          .transpose(2, 1, 0).reshape(POOL_COLS, H_FC1).astype(jnp.bfloat16))
    b1 = fc1_b.reshape(1, H_FC1).astype(jnp.float32)

    # Pad fc2 to 128 output lanes (zeros) for a lane-dense final matmul/store.
    w2 = jnp.zeros((H_FC1, PAD_OUT), jnp.float32).at[:, :N_CLASSES].set(fc2_w.T)
    w2 = w2.astype(jnp.bfloat16)
    b2 = jnp.zeros((1, PAD_OUT), jnp.float32).at[:, :N_CLASSES].set(fc2_b)
    return cw_toep, cb_tiled, w1, b1, w2, b2


@jax.jit
def cnn_forward(x, cw_toep, cb_tiled, w1, b1, w2, b2):
    """x: (B, 21) float32; packed params from pack_params. Returns (B, 2) f32."""
    B = x.shape[0]
    TB = min(128, _round_up(B, 8))          # batch tile (sublane-aligned)
    B_pad = _round_up(B, TB)
    if B_pad != B:
        x = jnp.pad(x, ((0, B_pad - B), (0, 0)))
    x_bf = x.astype(jnp.bfloat16)

    out = pl.pallas_call(
        cnn_kernel,
        out_shape=jax.ShapeDtypeStruct((B_pad, PAD_OUT), jnp.float32),
        grid_spec=pltpu.PrefetchScalarGridSpec(
            num_scalar_prefetch=0,
            grid=(B_pad // TB,),
            in_specs=[
                pl.BlockSpec((TB, INPUT_DIM), lambda i: (i, 0)),
                pl.BlockSpec((INPUT_DIM, CONV_COLS), lambda i: (0, 0)),
                pl.BlockSpec((1, CONV_COLS), lambda i: (0, 0)),
                pl.BlockSpec((POOL_COLS, H_FC1), lambda i: (0, 0)),
                pl.BlockSpec((1, H_FC1), lambda i: (0, 0)),
                pl.BlockSpec((H_FC1, PAD_OUT), lambda i: (0, 0)),
                pl.BlockSpec((1, PAD_OUT), lambda i: (0, 0)),
            ],
            out_specs=pl.BlockSpec((TB, PAD_OUT), lambda i: (i, 0)),
        ),
        compiler_params=pltpu.CompilerParams(
            dimension_semantics=("parallel",)),
    )(x_bf, cw_toep, cb_tiled, w1, b1, w2, b2)

    return out[:B, :N_CLASSES]


def torch_reference(x, conv_w, conv_b, fc1_w, fc1_b, fc2_w, fc2_b):
    """Pure-JAX f32 replica of the PyTorch forward (for verification)."""
    B = x.shape[0]
    patches = jnp.stack([x[:, t:t + K_CONV] for t in range(OUT_CONV)], axis=1)
    conv = jnp.einsum('btk,ck->bct', patches, conv_w[:, 0, :],
                      precision=jax.lax.Precision.HIGHEST) + conv_b[None, :, None]
    conv = jnp.maximum(conv, 0.0)                                   # (B, 128, 19)
    pool = conv[:, :, :OUT_POOL * K_POOL].reshape(
        B, C_CONV, OUT_POOL, K_POOL).max(axis=-1)                   # (B, 128, 9)
    flat = pool.reshape(B, C_CONV * OUT_POOL)                       # channel-major
    h = jnp.maximum(flat @ fc1_w.T + fc1_b, 0.0)
    return h @ fc2_w.T + fc2_b


if __name__ == "__main__":
    key = jax.random.PRNGKey(0)
    kx, k1, k2, k3, k4, k5, k6 = jax.random.split(key, 7)
    B = 8
    x = jax.random.normal(kx, (B, INPUT_DIM), jnp.float32)

    def uniform(k, shape, bound):
        return jax.random.uniform(k, shape, jnp.float32, -bound, bound)

    # Deterministic PyTorch-style init (uniform +/- 1/sqrt(fan_in)).
    bc = 1.0 / (1 * K_CONV) ** 0.5
    conv_w = uniform(k1, (C_CONV, 1, K_CONV), bc)
    conv_b = uniform(k2, (C_CONV,), bc)
    b1b = 1.0 / (C_CONV * OUT_POOL) ** 0.5
    fc1_w = uniform(k3, (H_FC1, C_CONV * OUT_POOL), b1b)
    fc1_b = uniform(k4, (H_FC1,), b1b)
    b2b = 1.0 / H_FC1 ** 0.5
    fc2_w = uniform(k5, (N_CLASSES, H_FC1), b2b)
    fc2_b = uniform(k6, (N_CLASSES,), b2b)

    packed = pack_params(conv_w, conv_b, fc1_w, fc1_b, fc2_w, fc2_b)
    out = jax.block_until_ready(cnn_forward(x, *packed))
    ref = torch_reference(x, conv_w, conv_b, fc1_w, fc1_b, fc2_w, fc2_b)

    assert out.shape == (B, N_CLASSES), out.shape
    # bf16 matmul operands with f32 accumulation -> slightly looser tolerance.
    assert jnp.allclose(out, ref, rtol=2e-2, atol=2e-2), (out, ref)
    print("KERNEL_OK")
</pallas_src>

<mosaic_0001>
module attributes {stable_mosaic.version = 11 : i64} {
  func.func @cnn_kernel(%arg0: i32, %arg1: memref<8x21xbf16, #tpu.memory_space<vmem>>, %arg2: memref<21x2432xbf16, #tpu.memory_space<vmem>>, %arg3: memref<1x2432xf32, #tpu.memory_space<vmem>>, %arg4: memref<1152x256xbf16, #tpu.memory_space<vmem>>, %arg5: memref<1x256xf32, #tpu.memory_space<vmem>>, %arg6: memref<256x128xbf16, #tpu.memory_space<vmem>>, %arg7: memref<1x128xf32, #tpu.memory_space<vmem>>, %arg8: memref<8x128xf32, #tpu.memory_space<vmem>>) attributes {dimension_semantics = [#tpu.dimension_semantics<parallel>], iteration_bounds = array<i64: 1>, scalar_prefetch = 0 : i64, scratch_operands = 0 : i64, tpu.core_type = #tpu.core_type<tc>, window_params = [{transform_indices = @transform_0, window_bounds = array<i64: 8, 21>}, {pipeline_mode = #tpu.pipeline_mode<synchronous>, transform_indices = @transform_1, window_bounds = array<i64: 21, 2432>}, {pipeline_mode = #tpu.pipeline_mode<synchronous>, transform_indices = @transform_2, window_bounds = array<i64: 1, 2432>}, {pipeline_mode = #tpu.pipeline_mode<synchronous>, transform_indices = @transform_3, window_bounds = array<i64: 1152, 256>}, {pipeline_mode = #tpu.pipeline_mode<synchronous>, transform_indices = @transform_4, window_bounds = array<i64: 1, 256>}, {pipeline_mode = #tpu.pipeline_mode<synchronous>, transform_indices = @transform_5, window_bounds = array<i64: 256, 128>}, {pipeline_mode = #tpu.pipeline_mode<synchronous>, transform_indices = @transform_6, window_bounds = array<i64: 1, 128>}, {transform_indices = @transform_7, window_bounds = array<i64: 8, 128>}]} {
    %c0 = arith.constant 0 : index
    %c0_0 = arith.constant 0 : index
    %0 = vector.load %arg1[%c0, %c0_0] : memref<8x21xbf16, #tpu.memory_space<vmem>>, vector<8x21xbf16>
    %c0_1 = arith.constant 0 : index
    %c0_2 = arith.constant 0 : index
    %1 = vector.load %arg2[%c0_1, %c0_2] : memref<21x2432xbf16, #tpu.memory_space<vmem>>, vector<21x2432xbf16>
    %cst = arith.constant dense<0.000000e+00> : vector<8x2432xf32>
    %2 = tpu.matmul %0, %1, %cst {dimension_numbers = #tpu.dot_dimension_numbers<[1], [0], [0], [1], [0, 0, 1, 1], [], []>} : vector<8x21xbf16>, vector<21x2432xbf16>, vector<8x2432xf32> -> vector<8x2432xf32>
    %c0_3 = arith.constant 0 : index
    %c0_4 = arith.constant 0 : index
    %3 = vector.load %arg3[%c0_3, %c0_4] : memref<1x2432xf32, #tpu.memory_space<vmem>>, vector<1x2432xf32>
    %4 = vector.broadcast %3 : vector<1x2432xf32> to vector<8x2432xf32>
    %5 = arith.addf %2, %4 : vector<8x2432xf32>
    %cst_5 = arith.constant 0.000000e+00 : f32
    %6 = vector.broadcast %cst_5 : f32 to vector<8x2432xf32>
    %7 = arith.maximumf %5, %6 : vector<8x2432xf32>
    %8 = vector.extract_strided_slice %7 {offsets = [0, 0], sizes = [8, 128], strides = [1, 1]} : vector<8x2432xf32> to vector<8x128xf32>
    %9 = vector.extract_strided_slice %7 {offsets = [0, 128], sizes = [8, 128], strides = [1, 1]} : vector<8x2432xf32> to vector<8x128xf32>
    %10 = arith.maximumf %8, %9 : vector<8x128xf32>
    %11 = vector.extract_strided_slice %7 {offsets = [0, 256], sizes = [8, 128], strides = [1, 1]} : vector<8x2432xf32> to vector<8x128xf32>
    %12 = vector.extract_strided_slice %7 {offsets = [0, 384], sizes = [8, 128], strides = [1, 1]} : vector<8x2432xf32> to vector<8x128xf32>
    %13 = arith.maximumf %11, %12 : vector<8x128xf32>
    %14 = vector.extract_strided_slice %7 {offsets = [0, 512], sizes = [8, 128], strides = [1, 1]} : vector<8x2432xf32> to vector<8x128xf32>
    %15 = vector.extract_strided_slice %7 {offsets = [0, 640], sizes = [8, 128], strides = [1, 1]} : vector<8x2432xf32> to vector<8x128xf32>
    %16 = arith.maximumf %14, %15 : vector<8x128xf32>
    %17 = vector.extract_strided_slice %7 {offsets = [0, 768], sizes = [8, 128], strides = [1, 1]} : vector<8x2432xf32> to vector<8x128xf32>
    %18 = vector.extract_strided_slice %7 {offsets = [0, 896], sizes = [8, 128], strides = [1, 1]} : vector<8x2432xf32> to vector<8x128xf32>
    %19 = arith.maximumf %17, %18 : vector<8x128xf32>
    %20 = vector.extract_strided_slice %7 {offsets = [0, 1024], sizes = [8, 128], strides = [1, 1]} : vector<8x2432xf32> to vector<8x128xf32>
    %21 = vector.extract_strided_slice %7 {offsets = [0, 1152], sizes = [8, 128], strides = [1, 1]} : vector<8x2432xf32> to vector<8x128xf32>
    %22 = arith.maximumf %20, %21 : vector<8x128xf32>
    %23 = vector.extract_strided_slice %7 {offsets = [0, 1280], sizes = [8, 128], strides = [1, 1]} : vector<8x2432xf32> to vector<8x128xf32>
    %24 = vector.extract_strided_slice %7 {offsets = [0, 1408], sizes = [8, 128], strides = [1, 1]} : vector<8x2432xf32> to vector<8x128xf32>
    %25 = arith.maximumf %23, %24 : vector<8x128xf32>
    %26 = vector.extract_strided_slice %7 {offsets = [0, 1536], sizes = [8, 128], strides = [1, 1]} : vector<8x2432xf32> to vector<8x128xf32>
    %27 = vector.extract_strided_slice %7 {offsets = [0, 1664], sizes = [8, 128], strides = [1, 1]} : vector<8x2432xf32> to vector<8x128xf32>
    %28 = arith.maximumf %26, %27 : vector<8x128xf32>
    %29 = vector.extract_strided_slice %7 {offsets = [0, 1792], sizes = [8, 128], strides = [1, 1]} : vector<8x2432xf32> to vector<8x128xf32>
    %30 = vector.extract_strided_slice %7 {offsets = [0, 1920], sizes = [8, 128], strides = [1, 1]} : vector<8x2432xf32> to vector<8x128xf32>
    %31 = arith.maximumf %29, %30 : vector<8x128xf32>
    %32 = vector.extract_strided_slice %7 {offsets = [0, 2048], sizes = [8, 128], strides = [1, 1]} : vector<8x2432xf32> to vector<8x128xf32>
    %33 = vector.extract_strided_slice %7 {offsets = [0, 2176], sizes = [8, 128], strides = [1, 1]} : vector<8x2432xf32> to vector<8x128xf32>
    %34 = arith.maximumf %32, %33 : vector<8x128xf32>
    %35 = tpu.concatenate %10, %13, %16, %19, %22, %25, %28, %31, %34 in 1 : vector<8x128xf32>, vector<8x128xf32>, vector<8x128xf32>, vector<8x128xf32>, vector<8x128xf32>, vector<8x128xf32>, vector<8x128xf32>, vector<8x128xf32>, vector<8x128xf32> -> vector<8x1152xf32>
    %36 = arith.truncf %35 : vector<8x1152xf32> to vector<8x1152xbf16>
    %c0_6 = arith.constant 0 : index
    %c0_7 = arith.constant 0 : index
    %37 = vector.load %arg4[%c0_6, %c0_7] : memref<1152x256xbf16, #tpu.memory_space<vmem>>, vector<1152x256xbf16>
    %cst_8 = arith.constant dense<0.000000e+00> : vector<8x256xf32>
    %38 = tpu.matmul %36, %37, %cst_8 {dimension_numbers = #tpu.dot_dimension_numbers<[1], [0], [0], [1], [0, 0, 1, 1], [], []>} : vector<8x1152xbf16>, vector<1152x256xbf16>, vector<8x256xf32> -> vector<8x256xf32>
    %c0_9 = arith.constant 0 : index
    %c0_10 = arith.constant 0 : index
    %39 = vector.load %arg5[%c0_9, %c0_10] : memref<1x256xf32, #tpu.memory_space<vmem>>, vector<1x256xf32>
    %40 = vector.broadcast %39 : vector<1x256xf32> to vector<8x256xf32>
    %41 = arith.addf %38, %40 : vector<8x256xf32>
    %cst_11 = arith.constant 0.000000e+00 : f32
    %42 = vector.broadcast %cst_11 : f32 to vector<8x256xf32>
    %43 = arith.maximumf %41, %42 : vector<8x256xf32>
    %44 = arith.truncf %43 : vector<8x256xf32> to vector<8x256xbf16>
    %c0_12 = arith.constant 0 : index
    %c0_13 = arith.constant 0 : index
    %45 = vector.load %arg6[%c0_12, %c0_13] : memref<256x128xbf16, #tpu.memory_space<vmem>>, vector<256x128xbf16>
    %cst_14 = arith.constant dense<0.000000e+00> : vector<8x128xf32>
    %46 = tpu.matmul %44, %45, %cst_14 {dimension_numbers = #tpu.dot_dimension_numbers<[1], [0], [0], [1], [0, 0, 1, 1], [], []>} : vector<8x256xbf16>, vector<256x128xbf16>, vector<8x128xf32> -> vector<8x128xf32>
    %c0_15 = arith.constant 0 : index
    %c0_16 = arith.constant 0 : index
    %47 = vector.load %arg7[%c0_15, %c0_16] : memref<1x128xf32, #tpu.memory_space<vmem>>, vector<1x128xf32>
    %48 = vector.broadcast %47 : vector<1x128xf32> to vector<8x128xf32>
    %49 = arith.addf %46, %48 : vector<8x128xf32>
    %c0_17 = arith.constant 0 : index
    %c0_18 = arith.constant 0 : index
    %50 = vector.load %arg8[%c0_17, %c0_18] : memref<8x128xf32, #tpu.memory_space<vmem>>, vector<8x128xf32>
    tpu.vector_store %arg8[%c0_17, %c0_18], %49 {strides = array<i32>} : memref<8x128xf32, #tpu.memory_space<vmem>>, vector<8x128xf32>,
    return
  }
  func.func @transform_0(%arg0: i32) -> (i32, i32) {
    %c0_i32 = arith.constant 0 : i32
    %c0_i32_0 = arith.constant 0 : i32
    return %arg0, %c0_i32 : i32, i32
  }
  func.func @transform_1(%arg0: i32) -> (i32, i32) {
    %c0_i32 = arith.constant 0 : i32
    %c0_i32_0 = arith.constant 0 : i32
    %c0_i32_1 = arith.constant 0 : i32
    return %c0_i32, %c0_i32_0 : i32, i32
  }
  func.func @transform_2(%arg0: i32) -> (i32, i32) {
    %c0_i32 = arith.constant 0 : i32
    %c0_i32_0 = arith.constant 0 : i32
    %c0_i32_1 = arith.constant 0 : i32
    return %c0_i32, %c0_i32_0 : i32, i32
  }
  func.func @transform_3(%arg0: i32) -> (i32, i32) {
    %c0_i32 = arith.constant 0 : i32
    %c0_i32_0 = arith.constant 0 : i32
    %c0_i32_1 = arith.constant 0 : i32
    return %c0_i32, %c0_i32_0 : i32, i32
  }
  func.func @transform_4(%arg0: i32) -> (i32, i32) {
    %c0_i32 = arith.constant 0 : i32
    %c0_i32_0 = arith.constant 0 : i32
    %c0_i32_1 = arith.constant 0 : i32
    return %c0_i32, %c0_i32_0 : i32, i32
  }
  func.func @transform_5(%arg0: i32) -> (i32, i32) {
    %c0_i32 = arith.constant 0 : i32
    %c0_i32_0 = arith.constant 0 : i32
    %c0_i32_1 = arith.constant 0 : i32
    return %c0_i32, %c0_i32_0 : i32, i32
  }
  func.func @transform_6(%arg0: i32) -> (i32, i32) {
    %c0_i32 = arith.constant 0 : i32
    %c0_i32_0 = arith.constant 0 : i32
    %c0_i32_1 = arith.constant 0 : i32
    return %c0_i32, %c0_i32_0 : i32, i32
  }
  func.func @transform_7(%arg0: i32) -> (i32, i32) {
    %c0_i32 = arith.constant 0 : i32
    %c0_i32_0 = arith.constant 0 : i32
    return %arg0, %c0_i32 : i32, i32
  }
}

</mosaic_0001>

<bundles_post_ra>
// kernel: cnn_forward.1
= control target key start
LH: loop header
LB: loop body
LE: loop exit
PB: predicated region body
PF: predicated region fallthrough
CT: control target
= control target key end

     0   :  { %12 = vsyncpa [#allocation3], 0  ;;  %s2865_s0 = inlined_call_operand.vmem [shape: bf16[8,21], index: 0, kind: input, shape index: {}]   ;;  %s2866_s1 = inlined_call_operand.hbm [shape: bf16[21,2432], index: 1, kind: input, shape index: {}]   ;;  %s2867_s2 = inlined_call_operand.hbm [shape: f32[1,2432], index: 2, kind: input, shape index: {}]   ;;  %s2868_s3 = inlined_call_operand.hbm [shape: bf16[1152,256], index: 3, kind: input, shape index: {}]   ;;  %s2869_s4 = inlined_call_operand.vmem [shape: f32[1,256], index: 4, kind: input, shape index: {}]   ;;  %s2870_s5 = inlined_call_operand.hbm [shape: bf16[256,128], index: 5, kind: input, shape index: {}]   ;;  %s2871_s6 = inlined_call_operand.vmem [shape: f32[1,128], index: 6, kind: input, shape index: {}]   ;;  %s2872_s7 = inlined_call_operand.vmem [shape: f32[8,128], index: 7, kind: output, shape index: {}]  }
   0x1   :  { %13 = vsyncpa [#allocation5], 0 }
   0x2   :  { %14 = vsyncpa [#allocation8], 0  ;;  %s2677_s24 = smov [#allocation4]   ;;  %s2678_s26 = smov [#allocation2]  }
   0x3   :  { %s35_s25 = sshll.u32 %s2677_s24, 4  ;;  %s22_s27 = sshll.u32 %s2678_s26, 4  ;;  %s36_s25 = int_to_ptr.vmem [resolvable:$true] %s35_s25  ;;  %s23_s27 = int_to_ptr.vmem [resolvable:$true] %s22_s27 }
   0x4   :  { %s2599_s28 = scalar_lea.vmem %s36_s25, 304  ;;  %s2603_s29 = scalar_lea.vmem %s36_s25, 320 }
   0x5   :  { %p2600_p0 = scmp.ne.s32.totalorder %s36_s25, %s2599_s28  ;;  %p2604_p1 = scmp.lt.s32.totalorder %s36_s25, %s36_s25 }
   0x6   :  { %p2605_p2 = scmp.lt.s32.totalorder %s2603_s29, %s2599_s28 }
   0x8   :  { %p2606_p3 = por %p2605_p2, %p2604_p1 }
   0xa   :  { %p2607_p4 = pnand %p2606_p3, %p2600_p0 }
   0xc   :  { %2610 = shalt.err (!%p2607_p4)
}
   0xd   :  { %38 = dma.hbm_to_vmem [thread:$0]  %s2867_s2, 304, %s36_s25, [#allocation5]  }
   0xe   :  { %s2619_s9 = scalar_lea.vmem %s23_s27, 3648  ;;  %p2624_p6 = scmp.lt.s32.totalorder %s23_s27, %s23_s27 }
   0xf   :  { %p2620_p5 = scmp.ne.s32.totalorder %s23_s27, %s2619_s9  ;;  %p2625_p7 = scmp.lt.s32.totalorder %s2619_s9, %s2619_s9 }
  0x11   :  { %p2626_p8 = por %p2625_p7, %p2624_p6 }
  0x13   :  { %p2627_p9 = pnand %p2626_p8, %p2620_p5 }
  0x15   :  { %2630 = shalt.err (!%p2627_p9)
}
  0x16   :  { %s2679_s10 = smov 1216   ;;  %s2680_s11 = smov 76  }
  0x17   :  { %28 = dma.hbm_to_vmem [thread:$0]  %s2866_s1, 3648, %s23_s27, [#allocation3], %s2679_s10, %s2679_s10, %s2680_s11  }
  0x18   :  { %s2681_s14 = smov [#allocation6]  }
  0x19   :  { %s44_s15 = sshll.u32 %s2681_s14, 4  ;;  %s45_s15 = int_to_ptr.vmem [resolvable:$true] %s44_s15 }
  0x1a   :  { %s2639_s16 = scalar_lea.vmem %s45_s15, 18432  ;;  %p2644_p11 = scmp.lt.s32.totalorder %s45_s15, %s45_s15 }
  0x1b   :  { %p2640_p10 = scmp.ne.s32.totalorder %s45_s15, %s2639_s16  ;;  %p2645_p12 = scmp.lt.s32.totalorder %s2639_s16, %s2639_s16 }
  0x1d   :  { %p2646_p13 = por %p2645_p12, %p2644_p11 }
  0x1f   :  { %p2647_p0 = pnand %p2646_p13, %p2640_p10 }
  0x21   :  { %2650 = shalt.err (!%p2647_p0)
}
  0x22   :  { %s2682_s2 = smov 128   ;;  %s2683_s17 = smov 8  }
  0x23   :  { %50 = dma.hbm_to_vmem [thread:$0]  %s2868_s3, 18432, %s45_s15, [#allocation5], %s2682_s2, %s2682_s2, %s2683_s17  }
  0x24   :  { %s2684_s20 = smov [#allocation7]  }
  0x25   :  { %s58_s21 = sshll.u32 %s2684_s20, 4  ;;  %s59_s21 = int_to_ptr.vmem [resolvable:$true] %s58_s21 }
  0x26   :  { %s2659_s1 = scalar_lea.vmem %s59_s21, 2048  ;;  %p2664_p2 = scmp.lt.s32.totalorder %s59_s21, %s59_s21 }
  0x27   :  { %p2660_p1 = scmp.ne.s32.totalorder %s59_s21, %s2659_s1  ;;  %p2665_p3 = scmp.lt.s32.totalorder %s2659_s1, %s2659_s1 }
  0x29   :  { %p2666_p4 = por %p2665_p3, %p2664_p2 }
  0x2b   :  { %p2667_p5 = pnand %p2666_p4, %p2660_p1 }
  0x2d   :  { %2670 = shalt.err (!%p2667_p5)
}
  0x2e   :  { %s2685_s22 = smov 64   ;;  %s2686_s23 = smov 4  }
  0x2f   :  { %64 = dma.hbm_to_vmem [thread:$0]  %s2870_s5, 2048, %s59_s21, [#allocation8], %s2685_s22, %s2685_s22, %s2686_s23  }
  0x30   :  { %2671 = dma.done.wait [#allocation3], 3648  }
  0x31   :  { %2672 = vsyncadd [#allocation3], 4294963648 }
  0x32   :  { %2673 = dma.done.wait [#allocation5], 18736  }
  0x33   :  { %2674 = vsyncadd [#allocation5], 4294948560 }
  0x34   :  { %2675 = dma.done.wait [#allocation8], 2048  }
  0x35   :  { %2676 = vsyncadd [#allocation8], 4294965248  ;;  %vm343_vm0 = vcmask 1041408   ;;  %v2687_v0 = vmov 0   ;;  %vm344_vm1 = vcmask 1042432   ;;  %v2688_v1 = vmov 65535  }
  0x36   :  { %433 = vmatprep.mubr.bf16.mxu0 %v2687_v0  ;;  %474 = vmatprep.mubr.bf16.mxu1 %v2687_v0  ;;  %v345_v2 = vsel %vm343_vm0, 4294967295, %v2688_v1  ;;  %v99_v3 = vld [vmem:[#allocation2 + $0x98] sm:$0x77]  ;;  %v100_v5 = vld [vmem:[#allocation2 + $0xa0] sm:$0x77]  ;;  %vm339_vm2 = vcmask 171008  }
  0x37   :  { %v2743_v4 = vsel %vm344_vm1, %v345_v2, 0  ;;  %v2093_v6 = vcombine.high %v99_v3, %v99_v3  ;;  %v2095_v7 = vcombine.high %v100_v5, %v100_v5  ;;  %v2092_v8 = vcombine.low %v99_v3, %v99_v3  ;;  %v2318_v14 = vld [vmem:[#allocation2 + $0x4] ss:$76 sps:$4 sm:$0xff]   ;;  %v2320_v15 = vld [vmem:[#allocation2 + $0xc] ss:$76 sps:$4 sm:$0xff]  }
  0x38   :  { %v2094_v9 = vcombine.low %v100_v5, %v100_v5  ;;  %v102_v16 = vld [vmem:[#allocation2 + $0xb0] sm:$0x77]  ;;  %v101_v18 = vld [vmem:[#allocation2 + $0xa8] sm:$0x77]  ;;  %v104_v26 = vld [vmem:[#allocation2 + $0xc0] sm:$0x77] }
  0x39   :  { %v351_v10 = vand.u32 %v2093_v6, %v2743_v4  ;;  %v357_v11 = vand.u32 %v2095_v7, %v2743_v4  ;;  %v348_v12 = vand.u32 %v2092_v8, %v2743_v4  ;;  %v2099_v17 = vcombine.high %v102_v16, %v102_v16  ;;  %v2322_v20 = vld [vmem:[#allocation2] ss:$76 sps:$4 sm:$0xff]   ;;  %v2323_v21 = vld [vmem:[#allocation2 + $0x8] ss:$76 sps:$4 sm:$0xff]   ;;  %v103_v27 = vld [vmem:[#allocation2 + $0xb8] sm:$0x77] }
  0x3a   :  { %v354_v13 = vand.u32 %v2094_v9, %v2743_v4  ;;  %v2097_v19 = vcombine.high %v101_v18, %v101_v18  ;;  %v2098_v22 = vcombine.low %v102_v16, %v102_v16  ;;  %v2096_v23 = vcombine.low %v101_v18, %v101_v18  ;;  %v2754_v28 = vld [vmem:[%s2865_s0] sm:$0xf]  ;;  %v2330_v31 = vld [vmem:[#allocation2 + $0x1c] ss:$76 sps:$4 sm:$0xff]   ;;  %v2328_v35 = vld [vmem:[#allocation2 + $0x18] ss:$76 sps:$4 sm:$0xff]  }
  0x3b   :  { %413 = vmatprep.subr.bf16.mxu0 %v351_v10  ;;  %454 = vmatprep.subr.bf16.mxu1 %v357_v11  ;;  %v369_v24 = vand.u32 %v2099_v17, %v2743_v4  ;;  %v2333_v32 = vld [vmem:[#allocation2 + $0x14] ss:$76 sps:$4 sm:$0xff]   ;;  %v2103_v33 = vcombine.high %v104_v26, %v104_v26  ;;  %v2101_v34 = vcombine.high %v103_v27, %v103_v27  ;;  %v2331_v36 = vld [vmem:[#allocation2 + $0x10] ss:$76 sps:$4 sm:$0xff]   ;;  %v105_v42 = vld [vmem:[#allocation2 + $0xc8] sm:$0x77] }
  0x3c   :  { %414 = vmatpush1.bf16.msra.mxu0 %v348_v12  ;;  %455 = vmatpush1.bf16.msra.mxu1 %v354_v13  ;;  %v363_v25 = vand.u32 %v2097_v19, %v2743_v4  ;;  %v366_v29 = vand.u32 %v2098_v22, %v2743_v4  ;;  %v360_v30 = vand.u32 %v2096_v23, %v2743_v4  ;;  %v106_v41 = vld [vmem:[#allocation2 + $0xd0] sm:$0x77]  ;;  %v2340_v45 = vld [vmem:[#allocation2 + $0x2c] ss:$76 sps:$4 sm:$0xff]   ;;  %v2350_v58 = vld [vmem:[#allocation2 + $0x3c] ss:$76 sps:$4 sm:$0xff]  }
  0x3d   :  { %415 = vmatprep.subr.bf16.mxu0 %v2318_v14  ;;  %456 = vmatprep.subr.bf16.mxu1 %v2320_v15  ;;  %v2102_v37 = vcombine.low %v104_v26, %v104_v26  ;;  %v2100_v38 = vcombine.low %v103_v27, %v103_v27  ;;  %v381_v39 = vand.u32 %v2103_v33, %v2743_v4  ;;  %v2343_v46 = vld [vmem:[#allocation2 + $0x24] ss:$76 sps:$4 sm:$0xff]   ;;  %v2338_v49 = vld [vmem:[#allocation2 + $0x28] ss:$76 sps:$4 sm:$0xff]   ;;  %v2341_v50 = vld [vmem:[#allocation2 + $0x20] ss:$76 sps:$4 sm:$0xff]  }
  0x3e   :  { %v375_v40 = vand.u32 %v2101_v34, %v2743_v4  ;;  %v2107_v47 = vcombine.high %v106_v41, %v106_v41  ;;  %v2105_v48 = vcombine.high %v105_v42, %v105_v42  ;;  %v2106_v51 = vcombine.low %v106_v41, %v106_v41  ;;  %v107_v55 = vld [vmem:[#allocation2 + $0xd8] sm:$0x77]  ;;  %v2353_v59 = vld [vmem:[#allocation2 + $0x34] ss:$76 sps:$4 sm:$0xff]   ;;  %v2358_v5 = vld [vmem:[#allocation2 + $0x44] ss:$76 sps:$4 sm:$0xff]  }
  0x3f   :  { %v378_v43 = vand.u32 %v2102_v37, %v2743_v4  ;;  %v372_v44 = vand.u32 %v2100_v38, %v2743_v4  ;;  %v2104_v52 = vcombine.low %v105_v42, %v105_v42  ;;  %v2109_v60 = vcombine.high %v107_v55, %v107_v55  ;;  %v2348_v61 = vld [vmem:[#allocation2 + $0x38] ss:$76 sps:$4 sm:$0xff]   ;;  %v2351_v62 = vld [vmem:[#allocation2 + $0x30] ss:$76 sps:$4 sm:$0xff]   ;;  %v2361_v2 = vld [vmem:[#allocation6 + $0x74] ss:$8 sps:$4 sm:$0xff]  }
  0x40   :  { %416 = vmatpush1.bf16.msra.mxu0 %v2322_v20  ;;  %457 = vmatpush1.bf16.msra.mxu1 %v2323_v21  ;;  %v393_v53 = vand.u32 %v2107_v47, %v2743_v4  ;;  %v387_v54 = vand.u32 %v2105_v48, %v2743_v4  ;;  %v390_v56 = vand.u32 %v2106_v51, %v2743_v4  ;;  %v2359_v6 = vld [vmem:[#allocation6 + $0x70] ss:$8 sps:$4 sm:$0xff]   ;;  %v2364_v7 = vld [vmem:[#allocation6 + $0x64] ss:$8 sps:$4 sm:$0xff]   ;;  %v2356_v8 = vld [vmem:[#allocation2 + $0x40] ss:$76 sps:$4 sm:$0xff]  }
  0x41   :  { %536 = vmatprep.subr.bf16.mxu1 %v369_v24  ;;  %495 = vmatprep.subr.bf16.mxu0 %v363_v25  ;;  %v384_v57 = vand.u32 %v2104_v52, %v2743_v4  ;;  %v2108_v63 = vcombine.low %v107_v55, %v107_v55  ;;  %v399_v1 = vand.u32 %v2109_v60, %v2743_v4  ;;  %v2362_v9 = vld [vmem:[#allocation6 + $0x60] ss:$8 sps:$4 sm:$0xff]   ;;  %v2370_v10 = vld [vmem:[#allocation6 + $0x174] ss:$8 sps:$4 sm:$0xff]   ;;  %v2365_v11 = vld [vmem:[#allocation6 + $0x50] ss:$8 sps:$4 sm:$0xff]  }
  0x42   :  { %v2368_v12 = vld [vmem:[#allocation6 + $0x170] ss:$8 sps:$4 sm:$0xff]   ;;  %v2376_v13 = vld [vmem:[#allocation6 + $0x164] ss:$8 sps:$4 sm:$0xff]   ;;  %v2371_v15 = vld [vmem:[#allocation6 + $0x40] ss:$8 sps:$4 sm:$0xff]  }
  0x43   :  { %2110 = vmatmul.mubr.msk.bf16.vlgmr.msra.gmra.mxu0 %vm339_vm2, %v2754_v28  ;;  %2111 = vmatmul.mubr.msk.bf16.vlgmr.msra.gmra.mxu1 %vm339_vm2, %v2754_v28  ;;  %v396_v3 = vand.u32 %v2108_v63, %v2743_v4  ;;  %v2367_v4 = vld [vmem:[#allocation6 + $0x54] ss:$8 sps:$4 sm:$0xff]   ;;  %v2373_v14 = vld [vmem:[#allocation6 + $0x44] ss:$8 sps:$4 sm:$0xff]   ;;  %v2374_v16 = vld [vmem:[#allocation6 + $0x160] ss:$8 sps:$4 sm:$0xff]  }
  0x44   :  { %537 = vmatpush1.bf16.msra.mxu1 %v366_v29  ;;  %496 = vmatpush1.bf16.msra.mxu0 %v360_v30  ;;  %v2382_v17 = vld [vmem:[#allocation6 + $0x154] ss:$8 sps:$4 sm:$0xff]   ;;  %v2377_v19 = vld [vmem:[#allocation6 + $0x30] ss:$8 sps:$4 sm:$0xff]   ;;  %v2385_v21 = vld [vmem:[#allocation6 + $0x24] ss:$8 sps:$4 sm:$0xff]  }
  0x45   :  { %538 = vmatprep.subr.bf16.mxu1 %v2330_v31  ;;  %497 = vmatprep.subr.bf16.mxu0 %v2333_v32  ;;  %v2379_v18 = vld [vmem:[#allocation6 + $0x34] ss:$8 sps:$4 sm:$0xff]   ;;  %v2380_v20 = vld [vmem:[#allocation6 + $0x150] ss:$8 sps:$4 sm:$0xff]   ;;  %v2388_v22 = vld [vmem:[#allocation6 + $0x144] ss:$8 sps:$4 sm:$0xff]  }
  0x46   :  { %556 = vmatprep.mubr.bf16.mxu1 %v2687_v0  ;;  %515 = vmatprep.mubr.bf16.mxu0 %v2687_v0  ;;  %v2386_v23 = vld [vmem:[#allocation6 + $0x140] ss:$8 sps:$4 sm:$0xff]   ;;  %v2394_v25 = vld [vmem:[#allocation6 + $0x134] ss:$8 sps:$4 sm:$0xff]   ;;  %v2392_v27 = vld [vmem:[#allocation6 + $0x130] ss:$8 sps:$4 sm:$0xff]  }
  0x47   :  { %v2383_v24 = vld [vmem:[#allocation6 + $0x20] ss:$8 sps:$4 sm:$0xff]   ;;  %v2391_v26 = vld [vmem:[#allocation6 + $0x14] ss:$8 sps:$4 sm:$0xff]   ;;  %v2400_v29 = vld [vmem:[#allocation6 + $0x124] ss:$8 sps:$4 sm:$0xff]  }
  0x48   :  { %539 = vmatpush1.bf16.msra.mxu1 %v2328_v35  ;;  %498 = vmatpush1.bf16.msra.mxu0 %v2331_v36  ;;  %v2397_v30 = vld [vmem:[#allocation6 + $0x4] ss:$8 sps:$4 sm:$0xff]   ;;  %v2398_v31 = vld [vmem:[#allocation6 + $0x120] ss:$8 sps:$4 sm:$0xff]   ;;  %v2406_v33 = vld [vmem:[#allocation6 + $0x114] ss:$8 sps:$4 sm:$0xff]  }
  0x49   :  { %618 = vmatprep.subr.bf16.mxu1 %v381_v39  ;;  %577 = vmatprep.subr.bf16.mxu0 %v375_v40  ;;  %v2395_v32 = vld [vmem:[#allocation6] ss:$8 sps:$4 sm:$0xff]   ;;  %v2403_v34 = vld [vmem:[#allocation6 + $0xf4] ss:$8 sps:$4 sm:$0xff]   ;;  %v2404_v35 = vld [vmem:[#allocation6 + $0x110] ss:$8 sps:$4 sm:$0xff]  }
  0x4a   :  { %v2401_v36 = vld [vmem:[#allocation6 + $0xf0] ss:$8 sps:$4 sm:$0xff]   ;;  %v2412_v37 = vld [vmem:[#allocation6 + $0x104] ss:$8 sps:$4 sm:$0xff]   ;;  %v2410_v39 = vld [vmem:[#allocation6 + $0x100] ss:$8 sps:$4 sm:$0xff]  }
  0x4b   :  { %2113 = vmatmul.mubr.msk.bf16.vlgmr.msra.gmra.mxu1 %vm339_vm2, %v2754_v28  ;;  %2112 = vmatmul.mubr.msk.bf16.vlgmr.msra.gmra.mxu0 %vm339_vm2, %v2754_v28  ;;  %v2409_v38 = vld [vmem:[#allocation6 + $0xe4] ss:$8 sps:$4 sm:$0xff]   ;;  %v2407_v40 = vld [vmem:[#allocation6 + $0xe0] ss:$8 sps:$4 sm:$0xff]   ;;  %v2418_v41 = vld [vmem:[#allocation6 + $0x1f4] ss:$8 sps:$4 sm:$0xff]  }
  0x4c   :  { %619 = vmatpush1.bf16.msra.mxu1 %v378_v43  ;;  %578 = vmatpush1.bf16.msra.mxu0 %v372_v44  ;;  %v2415_v42 = vld [vmem:[#allocation6 + $0xd4] ss:$8 sps:$4 sm:$0xff]   ;;  %v2416_v43 = vld [vmem:[#allocation6 + $0x1f0] ss:$8 sps:$4 sm:$0xff]   ;;  %v2419_v47 = vld [vmem:[#allocation6 + $0xc0] ss:$8 sps:$4 sm:$0xff]  }
  0x4d   :  { %620 = vmatprep.subr.bf16.mxu1 %v2340_v45  ;;  %579 = vmatprep.subr.bf16.mxu0 %v2343_v46  ;;  %v2413_v44 = vld [vmem:[#allocation6 + $0xd0] ss:$8 sps:$4 sm:$0xff]   ;;  %v2424_v45 = vld [vmem:[#allocation6 + $0x1e4] ss:$8 sps:$4 sm:$0xff]   ;;  %v2422_v48 = vld [vmem:[#allocation6 + $0x1e0] ss:$8 sps:$4 sm:$0xff]  }
  0x4e   :  { %638 = vmatprep.mubr.bf16.mxu1 %v2687_v0  ;;  %597 = vmatprep.mubr.bf16.mxu0 %v2687_v0  ;;  %v2421_v46 = vld [vmem:[#allocation6 + $0xc4] ss:$8 sps:$4 sm:$0xff]   ;;  %v2428_v51 = vld [vmem:[#allocation6 + $0x1d0] ss:$8 sps:$4 sm:$0xff]   ;;  %v2431_v55 = vld [vmem:[#allocation6 + $0xa0] ss:$8 sps:$4 sm:$0xff]  }
  0x4f   :  { %v2425_v52 = vld [vmem:[#allocation6 + $0xb0] ss:$8 sps:$4 sm:$0xff]   ;;  %v2446_v63 = vld [vmem:[#allocation6 + $0x1a0] ss:$8 sps:$4 sm:$0xff]  }
  0x50   :  { %621 = vmatpush1.bf16.msra.mxu1 %v2338_v49  ;;  %580 = vmatpush1.bf16.msra.mxu0 %v2341_v50  ;;  %v2427_v49 = vld [vmem:[#allocation6 + $0xb4] ss:$8 sps:$4 sm:$0xff]   ;;  %v2437_v60 = vld [vmem:[#allocation6 + $0x90] ss:$8 sps:$4 sm:$0xff]  }
  0x51   :  { %700 = vmatprep.subr.bf16.mxu1 %v393_v53  ;;  %659 = vmatprep.subr.bf16.mxu0 %v387_v54  ;;  %v2430_v50 = vld [vmem:[#allocation6 + $0x1d4] ss:$8 sps:$4 sm:$0xff]   ;;  %v2436_v53 = vld [vmem:[#allocation6 + $0x1c4] ss:$8 sps:$4 sm:$0xff]  }
  0x52   :  { %v2433_v54 = vld [vmem:[#allocation6 + $0xa4] ss:$8 sps:$4 sm:$0xff]  }
  0x53   :  { %2115 = vmatmul.mubr.msk.bf16.vlgmr.msra.gmra.mxu1 %vm339_vm2, %v2754_v28  ;;  %2114 = vmatmul.mubr.msk.bf16.vlgmr.msra.gmra.mxu0 %vm339_vm2, %v2754_v28 }
  0x54   :  { %701 = vmatpush1.bf16.msra.mxu1 %v390_v56  ;;  %660 = vmatpush1.bf16.msra.mxu0 %v384_v57  ;;  %v2434_v56 = vld [vmem:[#allocation6 + $0x1c0] ss:$8 sps:$4 sm:$0xff]   ;;  %v2439_v57 = vld [vmem:[#allocation6 + $0x94] ss:$8 sps:$4 sm:$0xff]  }
  0x55   :  { %702 = vmatprep.subr.bf16.mxu1 %v2350_v58  ;;  %661 = vmatprep.subr.bf16.mxu0 %v2353_v59  ;;  %v2442_v58 = vld [vmem:[#allocation6 + $0x1b4] ss:$8 sps:$4 sm:$0xff]   ;;  %v2440_v59 = vld [vmem:[#allocation6 + $0x1b0] ss:$8 sps:$4 sm:$0xff]  }
  0x56   :  { %720 = vmatprep.mubr.bf16.mxu1 %v2687_v0  ;;  %679 = vmatprep.mubr.bf16.mxu0 %v2687_v0 }
  0x58   :  { %703 = vmatpush1.bf16.msra.mxu1 %v2348_v61  ;;  %662 = vmatpush1.bf16.msra.mxu0 %v2351_v62  ;;  %v2448_v61 = vld [vmem:[#allocation6 + $0x1a4] ss:$8 sps:$4 sm:$0xff]  }
  0x59   :  { %741 = vmatprep.subr.bf16.mxu0 %v399_v1  ;;  %1682 = vmatprep.subr.bf16.mxu1 %v2361_v2  ;;  %v2445_v62 = vld [vmem:[#allocation6 + $0x84] ss:$8 sps:$4 sm:$0xff]   ;;  %v2443_v1 = vld [vmem:[#allocation6 + $0x80] ss:$8 sps:$4 sm:$0xff]   ;;  %v2451_v2 = vld [vmem:[#allocation6 + $0x194] ss:$8 sps:$4 sm:$0xff]  }
  0x5b   :  { %2117 = vmatmul.mubr.msk.bf16.vlgmr.msra.gmra.mxu1 %vm339_vm2, %v2754_v28  ;;  %2116 = vmatmul.mubr.msk.bf16.vlgmr.msra.gmra.mxu0 %vm339_vm2, %v2754_v28 }
  0x5c   :  { %742 = vmatpush1.bf16.msra.mxu0 %v396_v3  ;;  %761 = vmatprep.mubr.bf16.mxu0 %v2687_v0  ;;  %v2454_v3 = vld [vmem:[#allocation6 + $0x274] ss:$8 sps:$4 sm:$0xff]  }
  0x5d   :  { %743 = vmatprep.subr.bf16.mxu0 %v2358_v5  ;;  %1683 = vmatpush1.bf16.msra.mxu1 %v2359_v6  ;;  %v2449_v5 = vld [vmem:[#allocation6 + $0x190] ss:$8 sps:$4 sm:$0xff]   ;;  %v2457_v6 = vld [vmem:[#allocation6 + $0x184] ss:$8 sps:$4 sm:$0xff]  }
  0x5e   :  { %1684 = vmatprep.subr.bf16.mxu1 %v2364_v7  ;;  %v2455_v7 = vld [vmem:[#allocation6 + $0x180] ss:$8 sps:$4 sm:$0xff]  }
  0x60   :  { %744 = vmatpush1.bf16.msra.mxu0 %v2356_v8  ;;  %v2466_v8 = vld [vmem:[#allocation6 + $0x374] ss:$8 sps:$4 sm:$0xff]  }
  0x61   :  { %1685 = vmatpush1.bf16.msra.mxu1 %v2362_v9  ;;  %1723 = vmatprep.subr.bf16.mxu0 %v2370_v10  ;;  %v114_v9 = vlaneseq }
  0x62   :  { %1686 = vmatprep.subr.bf16.mxu1 %v2367_v4 }
  0x63   :  { %2118 = vmatmul.mubr.msk.bf16.vlgmr.msra.gmra.mxu0 %vm339_vm2, %v2754_v28  ;;  %v2389_v28 = vld [vmem:[#allocation6 + $0x10] ss:$8 sps:$4 sm:$0xff]   ;;  %v2793_v10 = vshrl.u32 %v114_v9, 7 }
  0x64   :  { %1724 = vmatpush1.bf16.msra.mxu0 %v2368_v12  ;;  %v108_v12 = vld [vmem:[#allocation4] sm:$0xff] }
  0x65   :  { %1687 = vmatpush1.bf16.msra.mxu1 %v2365_v11  ;;  %1725 = vmatprep.subr.bf16.mxu0 %v2376_v13  ;;  %v2796_v4 = vsub.s32 0, %v2793_v10  ;;  %v124_v11 = vsub.s32 2, %v2793_v10  ;;  %v2800_v13 = vsub.s32 1, %v2793_v10 }
  0x66   :  { %1688 = vmatprep.subr.bf16.mxu1 %v2373_v14  ;;  %v128_v14 = vsub.s32 3, %v2793_v10 }
  0x68   :  { %1726 = vmatpush1.bf16.msra.mxu0 %v2374_v16  ;;  %v125_v16 = vrot.slane %v108_v12, %v124_v11 }
  0x69   :  { %1689 = vmatpush1.bf16.msra.mxu1 %v2371_v15  ;;  %1727 = vmatprep.subr.bf16.mxu0 %v2382_v17  ;;  %v117_v15 = vrot.slane %v108_v12, %v2796_v4  ;;  %v121_v17 = vrot.slane %v108_v12, %v2800_v13 }
  0x6a   :  { %1690 = vmatprep.subr.bf16.mxu1 %v2379_v18  ;;  %v129_v18 = vrot.slane %v108_v12, %v128_v14 }
  0x6c   :  { %1728 = vmatpush1.bf16.msra.mxu0 %v2380_v20 }
  0x6d   :  { %1691 = vmatpush1.bf16.msra.mxu1 %v2377_v19  ;;  %1729 = vmatprep.subr.bf16.mxu0 %v2388_v22 }
  0x6e   :  { %1692 = vmatprep.subr.bf16.mxu1 %v2385_v21  ;;  %v140_v21 = vsub.s32 6, %v2793_v10 }
  0x70   :  { %1730 = vmatpush1.bf16.msra.mxu0 %v2386_v23 }
  0x71   :  { %1693 = vmatpush1.bf16.msra.mxu1 %v2383_v24  ;;  %1731 = vmatprep.subr.bf16.mxu0 %v2394_v25  ;;  %v132_v24 = vsub.s32 4, %v2793_v10 }
  0x72   :  { %1694 = vmatprep.subr.bf16.mxu1 %v2391_v26 }
  0x74   :  { %1732 = vmatpush1.bf16.msra.mxu0 %v2392_v27  ;;  %v144_v27 = vsub.s32 7, %v2793_v10 }
  0x75   :  { %1695 = vmatpush1.bf16.msra.mxu1 %v2389_v28  ;;  %1733 = vmatprep.subr.bf16.mxu0 %v2400_v29 }
  0x76   :  { %1696 = vmatprep.subr.bf16.mxu1 %v2397_v30 }
  0x78   :  { %1734 = vmatpush1.bf16.msra.mxu0 %v2398_v31  ;;  %v136_v31 = vsub.s32 5, %v2793_v10 }
  0x79   :  { %1697 = vmatpush1.bf16.msra.mxu1 %v2395_v32  ;;  %1735 = vmatprep.subr.bf16.mxu0 %v2406_v33 }
  0x7a   :  { %1698 = vmatprep.subr.bf16.mxu1 %v2403_v34  ;;  %v141_v34 = vrot.slane %v108_v12, %v140_v21 }
  0x7c   :  { %1736 = vmatpush1.bf16.msra.mxu0 %v2404_v35 }
  0x7d   :  { %1699 = vmatpush2.bf16.msra.mxu1 %v2401_v36  ;;  %1737 = vmatprep.subr.bf16.mxu0 %v2412_v37 }
  0x7e   :  { %1700 = vmatprep.subr.bf16.mxu1 %v2409_v38  ;;  %v133_v38 = vrot.slane %v108_v12, %v132_v24 }
  0x80   :  { %1738 = vmatpush1.bf16.msra.mxu0 %v2410_v39 }
  0x81   :  { %1701 = vmatpush2.bf16.msra.mxu1 %v2407_v40  ;;  %1739 = vmatprep.subr.bf16.mxu0 %v2418_v41 }
  0x82   :  { %1702 = vmatprep.subr.bf16.mxu1 %v2415_v42 }
  0x84   :  { %1740 = vmatpush2.bf16.msra.mxu0 %v2416_v43  ;;  %v145_v43 = vrot.slane %v108_v12, %v144_v27 }
  0x85   :  { %1703 = vmatpush2.bf16.msra.mxu1 %v2413_v44  ;;  %1741 = vmatprep.subr.bf16.mxu0 %v2424_v45  ;;  %v137_v44 = vrot.slane %v108_v12, %v136_v31 }
  0x86   :  { %1704 = vmatprep.subr.bf16.mxu1 %v2421_v46 }
  0x88   :  { %1742 = vmatpush2.bf16.msra.mxu0 %v2422_v48 }
  0x89   :  { %1705 = vmatpush2.bf16.msra.mxu1 %v2419_v47  ;;  %1743 = vmatprep.subr.bf16.mxu0 %v2430_v50 }
  0x8a   :  { %1706 = vmatprep.subr.bf16.mxu1 %v2427_v49 }
  0x8c   :  { %1744 = vmatpush2.bf16.msra.mxu0 %v2428_v51  ;;  %v2452_v51 = vld [vmem:[#allocation6 + $0x270] ss:$8 sps:$4 sm:$0xff]  }
  0x8d   :  { %1707 = vmatpush2.bf16.msra.mxu1 %v2425_v52  ;;  %1745 = vmatprep.subr.bf16.mxu0 %v2436_v53 }
  0x8e   :  { %1708 = vmatprep.subr.bf16.mxu1 %v2433_v54  ;;  %v2460_v54 = vld [vmem:[#allocation6 + $0x264] ss:$8 sps:$4 sm:$0xff]  }
  0x90   :  { %1746 = vmatpush2.bf16.msra.mxu0 %v2434_v56 }
  0x91   :  { %1709 = vmatpush2.bf16.msra.mxu1 %v2431_v55  ;;  %1747 = vmatprep.subr.bf16.mxu0 %v2442_v58  ;;  %v2817_v55 = vld [vmem:[#allocation4 + $0x8] sm:$0xff] }
  0x92   :  { %1710 = vmatprep.subr.bf16.mxu1 %v2439_v57  ;;  %v161_v9 = vrot.slane %v2817_v55, %v128_v14 }
  0x94   :  { %1748 = vmatpush2.bf16.msra.mxu0 %v2440_v59 }
  0x95   :  { %1711 = vmatpush2.bf16.msra.mxu1 %v2437_v60  ;;  %1749 = vmatprep.subr.bf16.mxu0 %v2448_v61 }
  0x96   :  { %1712 = vmatprep.subr.bf16.mxu1 %v2445_v62 }
  0x98   :  { %1750 = vmatpush2.bf16.msra.mxu0 %v2446_v63 }
  0x99   :  { %1713 = vmatpush2.bf16.msra.mxu1 %v2443_v1  ;;  %1751 = vmatprep.subr.bf16.mxu0 %v2451_v2  ;;  %v2458_v1 = vld [vmem:[#allocation6 + $0x260] ss:$8 sps:$4 sm:$0xff]   ;;  %v157_v2 = vrot.slane %v2817_v55, %v124_v11  ;;  %v2472_v11 = vld [vmem:[#allocation6 + $0x364] ss:$8 sps:$4 sm:$0xff]  }
  0x9a   :  { %1764 = vmatprep.subr.bf16.mxu1 %v2454_v3  ;;  %v2463_v3 = vld [vmem:[#allocation6 + $0x254] ss:$8 sps:$4 sm:$0xff]  }
  0x9c   :  { %1752 = vmatpush2.bf16.msra.mxu0 %v2449_v5 }
  0x9d   :  { %1753 = vmatprep.subr.bf16.mxu0 %v2457_v6 }
  0xa0   :  { %1754 = vmatpush2.bf16.msra.mxu0 %v2455_v7 }
  0xa1   :  { %1805 = vmatprep.subr.bf16.mxu0 %v2466_v8 }
 0x103   :  { %v435_v19 = vpop.f32.mrf.mxu0  ;;  %v476_v20 = vpop.f32.mrf.mxu1 }
 0x104   :  { %v436_v22 = vadd.f32 %v435_v19, %v117_v15  ;;  %v477_v23 = vadd.f32 %v476_v20, %v125_v16  ;;  %v2464_v19 = vld [vmem:[#allocation6 + $0x370] ss:$8 sps:$4 sm:$0xff]  }
 0x105   :  { %v437_v25 = vpop.f32.mrf.mxu0  ;;  %v478_v26 = vpop.f32.mrf.mxu1 }
 0x106   :  { %v770_v28 = vmax.f32 %v436_v22, 0.0  ;;  %v438_v29 = vadd.f32 %v437_v25, %v121_v17  ;;  %v479_v30 = vadd.f32 %v478_v26, %v129_v18  ;;  %v772_v35 = vmax.f32 %v477_v23, 0.0  ;;  %v2461_v18 = vld [vmem:[#allocation6 + $0x250] ss:$8 sps:$4 sm:$0xff]   ;;  %v2469_v22 = vld [vmem:[#allocation6 + $0x244] ss:$8 sps:$4 sm:$0xff]  }
 0x107   :  { %v439_v32 = vpop.f32.mrf.mxu0  ;;  %v480_v33 = vpop.f32.mrf.mxu1 }
 0x108   :  { %v771_v36 = vmax.f32 %v438_v29, 0.0  ;;  %v773_v37 = vmax.f32 %v479_v30, 0.0  ;;  %v2467_v30 = vld [vmem:[#allocation6 + $0x240] ss:$8 sps:$4 sm:$0xff]  }
 0x109   :  { %v440_v39 = vpop.f32.mrf.mxu0  ;;  %v481_v40 = vpop.f32.mrf.mxu1  ;;  %v2470_v32 = vld [vmem:[#allocation6 + $0x360] ss:$8 sps:$4 sm:$0xff]  }
 0x10a   :  { %v788_v41 = vmax.f32 %v770_v28, %v771_v36  ;;  %v789_v42 = vmax.f32 %v772_v35, %v773_v37  ;;  %v2475_v35 = vld [vmem:[#allocation6 + $0x234] ss:$8 sps:$4 sm:$0xff]   ;;  %v165_v39 = vrot.slane %v2817_v55, %v132_v24  ;;  %v2481_v24 = vld [vmem:[#allocation6 + $0x224] ss:$8 sps:$4 sm:$0xff]  }
 0x10b   :  { %v558_v45 = vpop.f32.mrf.mxu1  ;;  %v517_v46 = vpop.f32.mrf.mxu0  ;;  %v2478_v36 = vld [vmem:[#allocation6 + $0x354] ss:$8 sps:$4 sm:$0xff]  }
 0x10c   :  { %v797_v47 = vpack.c.bf16 %v788_v41, %v788_v41  ;;  %v798_v48 = vpack.c.bf16 %v789_v42, %v789_v42  ;;  %v559_v49 = vadd.f32 %v558_v45, %v141_v34  ;;  %v518_v50 = vadd.f32 %v517_v46, %v133_v38  ;;  %v2476_v45 = vld [vmem:[#allocation6 + $0x350] ss:$8 sps:$4 sm:$0xff]  }
 0x10d   :  { %v560_v52 = vpop.f32.mrf.mxu1  ;;  %v519_v53 = vpop.f32.mrf.mxu0  ;;  %v173_v34 = vrot.slane %v2817_v55, %v140_v21  ;;  %v177_v41 = vrot.slane %v2817_v55, %v144_v27  ;;  %v169_v42 = vrot.slane %v2817_v55, %v136_v31  ;;  %v110_v27 = vld [vmem:[#allocation4 + $0x10] sm:$0x7] }
 0x10e   :  { %v776_v56 = vmax.f32 %v559_v49, 0.0  ;;  %v774_v57 = vmax.f32 %v518_v50, 0.0  ;;  %v561_v58 = vadd.f32 %v560_v52, %v145_v43  ;;  %v520_v59 = vadd.f32 %v519_v53, %v137_v44  ;;  %1714 = vmatprep.mubr.bf16.mxu1 %v798_v48  ;;  %v2473_v44 = vld [vmem:[#allocation6 + $0x230] ss:$8 sps:$4 sm:$0xff]   ;;  %v2484_v48 = vld [vmem:[#allocation6 + $0x344] ss:$8 sps:$4 sm:$0xff]  }
 0x10f   :  { %1715 = vmatmul.mubr.bf16.vlgmr.msra.gmra.mxu1 %v797_v47  ;;  %v562_v60 = vpop.f32.mrf.mxu1  ;;  %v521_v61 = vpop.f32.mrf.mxu0 }
 0x110   :  { %v777_v62 = vmax.f32 %v561_v58, 0.0  ;;  %v775_v63 = vmax.f32 %v520_v59, 0.0  ;;  %1765 = vmatpush1.bf16.msra.mxu1 %v2452_v51  ;;  %v2482_v58 = vld [vmem:[#allocation6 + $0x340] ss:$8 sps:$4 sm:$0xff]   ;;  %v181_v61 = vrot.slane %v110_v27, %v2796_v4 }
 0x111   :  { %1766 = vmatprep.subr.bf16.mxu1 %v2460_v54  ;;  %v563_v5 = vpop.f32.mrf.mxu1  ;;  %v522_v6 = vpop.f32.mrf.mxu0 }
 0x112   :  { %v791_v7 = vmax.f32 %v776_v56, %v777_v62  ;;  %v790_v8 = vmax.f32 %v774_v57, %v775_v63  ;;  %v2479_v57 = vld [vmem:[#allocation6 + $0x220] ss:$8 sps:$4 sm:$0xff]   ;;  %v2487_v62 = vld [vmem:[#allocation6 + $0x214] ss:$8 sps:$4 sm:$0xff]   ;;  %v185_v6 = vrot.slane %v110_v27, %v2800_v13  ;;  %v2532_v27 = vld [vmem:[#allocation6 + $0x3c4] ss:$8 sps:$4 sm:$0xff]  }
 0x113   :  { %v640_v12 = vpop.f32.mrf.mxu1  ;;  %v2821_v15 = vpop.f32.mrf.mxu0  ;;  %v2490_v63 = vld [vmem:[#allocation6 + $0x334] ss:$8 sps:$4 sm:$0xff]  }
 0x114   :  { %v800_v16 = vpack.c.bf16 %v791_v7, %v791_v7  ;;  %v799_v17 = vpack.c.bf16 %v790_v8, %v790_v8  ;;  %1767 = vmatpush1.bf16.msra.mxu1 %v2458_v1  ;;  %v641_v20 = vadd.f32 %v640_v12, %v157_v2  ;;  %v2485_v8 = vld [vmem:[#allocation6 + $0x210] ss:$8 sps:$4 sm:$0xff]  }
 0x115   :  { %1768 = vmatprep.subr.bf16.mxu1 %v2463_v3  ;;  %v642_v23 = vpop.f32.mrf.mxu1  ;;  %v2823_v25 = vpop.f32.mrf.mxu0 }
 0x116   :  { %1755 = vmatprep.mubr.bf16.mxu0 %v800_v16  ;;  %v780_v26 = vmax.f32 %v641_v20, 0.0  ;;  %v643_v28 = vadd.f32 %v642_v23, %v161_v9  ;;  %v2488_v9 = vld [vmem:[#allocation6 + $0x330] ss:$8 sps:$4 sm:$0xff]   ;;  %v2491_v23 = vld [vmem:[#allocation6 + $0x200] ss:$8 sps:$4 sm:$0xff]  }
 0x117   :  { %1756 = vmatmul.mubr.bf16.vlgmr.msra.gmra.mxu0 %v799_v17  ;;  %v644_v14 = vpop.f32.mrf.mxu1  ;;  %v603_v29 = vpop.f32.mrf.mxu0  ;;  %v2493_v17 = vld [vmem:[#allocation6 + $0x204] ss:$8 sps:$4 sm:$0xff]  }
 0x118   :  { %1769 = vmatpush1.bf16.msra.mxu1 %v2461_v18  ;;  %1806 = vmatpush1.bf16.msra.mxu0 %v2464_v19  ;;  %v781_v33 = vmax.f32 %v643_v28, 0.0  ;;  %v2496_v18 = vld [vmem:[#allocation6 + $0x324] ss:$8 sps:$4 sm:$0xff]   ;;  %v2499_v14 = vld [vmem:[#allocation6 + $0x2f4] ss:$8 sps:$4 sm:$0xff]  }
 0x119   :  { %1770 = vmatprep.subr.bf16.mxu1 %v2469_v22  ;;  %1807 = vmatprep.subr.bf16.mxu0 %v2472_v11  ;;  %v645_v37 = vpop.f32.mrf.mxu1  ;;  %v604_v38 = vpop.f32.mrf.mxu0  ;;  %v2502_v29 = vld [vmem:[#allocation6 + $0x314] ss:$8 sps:$4 sm:$0xff]  }
 0x11a   :  { %v793_v40 = vmax.f32 %v780_v26, %v781_v33  ;;  %v2494_v26 = vld [vmem:[#allocation6 + $0x320] ss:$8 sps:$4 sm:$0xff]   ;;  %v2497_v33 = vld [vmem:[#allocation6 + $0x2f0] ss:$8 sps:$4 sm:$0xff]  }
 0x11b   :  { %v722_v21 = vpop.f32.mrf.mxu1  ;;  %v681_v43 = vpop.f32.mrf.mxu0  ;;  %v2503_v37 = vld [vmem:[#allocation6 + $0x2e0] ss:$8 sps:$4 sm:$0xff]  }
 0x11c   :  { %1771 = vmatpush1.bf16.msra.mxu1 %v2467_v30  ;;  %1808 = vmatpush1.bf16.msra.mxu0 %v2470_v32  ;;  %v802_v46 = vpack.c.bf16 %v793_v40, %v793_v40  ;;  %v723_v47 = vadd.f32 %v722_v21, %v173_v34  ;;  %v682_v49 = vadd.f32 %v681_v43, %v165_v39  ;;  %v2500_v34 = vld [vmem:[#allocation6 + $0x310] ss:$8 sps:$4 sm:$0xff]   ;;  %v2506_v38 = vld [vmem:[#allocation6 + $0x300] ss:$8 sps:$4 sm:$0xff]   ;;  %v2511_v39 = vld [vmem:[#allocation6 + $0x2d4] ss:$8 sps:$4 sm:$0xff]  }
 0x11d   :  { %1772 = vmatprep.subr.bf16.mxu1 %v2475_v35  ;;  %1809 = vmatprep.subr.bf16.mxu0 %v2478_v36  ;;  %v724_v50 = vpop.f32.mrf.mxu1  ;;  %v683_v51 = vpop.f32.mrf.mxu0  ;;  %v2505_v35 = vld [vmem:[#allocation6 + $0x2e4] ss:$8 sps:$4 sm:$0xff]   ;;  %v2514_v40 = vld [vmem:[#allocation6 + $0x3f4] ss:$8 sps:$4 sm:$0xff]  }
 0x11e   :  { %v784_v52 = vmax.f32 %v723_v47, 0.0  ;;  %v725_v10 = vadd.f32 %v724_v50, %v177_v41  ;;  %1796 = vmatprep.mubr.bf16.mxu1 %v802_v46  ;;  %v684_v31 = vadd.f32 %v683_v51, %v169_v42  ;;  %v782_v53 = vmax.f32 %v682_v49, 0.0  ;;  %v2508_v36 = vld [vmem:[#allocation6 + $0x304] ss:$8 sps:$4 sm:$0xff]   ;;  %v2509_v41 = vld [vmem:[#allocation6 + $0x2d0] ss:$8 sps:$4 sm:$0xff]  }
 0x11f   :  { %v685_v54 = vpop.f32.mrf.mxu0  ;;  %v726_v56 = vpop.f32.mrf.mxu1  ;;  %v2512_v42 = vld [vmem:[#allocation6 + $0x3f0] ss:$8 sps:$4 sm:$0xff]   ;;  %v2517_v21 = vld [vmem:[#allocation6 + $0x2c4] ss:$8 sps:$4 sm:$0xff]   ;;  %v2523_v46 = vld [vmem:[#allocation6 + $0x2b4] ss:$8 sps:$4 sm:$0xff]  }
 0x120   :  { %1773 = vmatpush1.bf16.msra.mxu1 %v2473_v44  ;;  %1810 = vmatpush1.bf16.msra.mxu0 %v2476_v45  ;;  %v785_v59 = vmax.f32 %v725_v10, 0.0  ;;  %v783_v60 = vmax.f32 %v684_v31, 0.0  ;;  %v2520_v43 = vld [vmem:[#allocation6 + $0x3e4] ss:$8 sps:$4 sm:$0xff]   ;;  %v2515_v44 = vld [vmem:[#allocation6 + $0x2c0] ss:$8 sps:$4 sm:$0xff]  }
 0x121   :  { %1774 = vmatprep.subr.bf16.mxu1 %v2481_v24  ;;  %1811 = vmatprep.subr.bf16.mxu0 %v2484_v48  ;;  %v686_v1 = vpop.f32.mrf.mxu0  ;;  %v727_v2 = vpop.f32.mrf.mxu1  ;;  %v2518_v45 = vld [vmem:[#allocation6 + $0x3e0] ss:$8 sps:$4 sm:$0xff]   ;;  %v2526_v47 = vld [vmem:[#allocation6 + $0x3d4] ss:$8 sps:$4 sm:$0xff]   ;;  %v149_v24 = vrot.slane %v2817_v55, %v2796_v4  ;;  %v153_v48 = vrot.slane %v2817_v55, %v2800_v13  ;;  %v2521_v49 = vld [vmem:[#allocation6 + $0x2b0] ss:$8 sps:$4 sm:$0xff]  }
 0x122   :  { %v795_v3 = vmax.f32 %v784_v52, %v785_v59  ;;  %v2838_v5 = vmax.f32 %v782_v53, %v783_v60  ;;  %v2524_v50 = vld [vmem:[#allocation6 + $0x3d0] ss:$8 sps:$4 sm:$0xff]   ;;  %v2529_v51 = vld [vmem:[#allocation6 + $0x2a4] ss:$8 sps:$4 sm:$0xff]   ;;  %v2527_v31 = vld [vmem:[#allocation6 + $0x2a0] ss:$8 sps:$4 sm:$0xff]  }
 0x123   :  { %v763_v7 = vpop.f32.mrf.mxu0  ;;  %v600_v52 = vadd.f32 %v2821_v15, %v149_v24  ;;  %v602_v10 = vadd.f32 %v2823_v25, %v153_v48  ;;  %v2530_v53 = vld [vmem:[#allocation6 + $0x3c0] ss:$8 sps:$4 sm:$0xff]   ;;  %v2535_v54 = vld [vmem:[#allocation6 + $0x294] ss:$8 sps:$4 sm:$0xff]   ;;  %v2536_v59 = vld [vmem:[#allocation6 + $0x3b0] ss:$8 sps:$4 sm:$0xff]  }
 0x124   :  { %1775 = vmatpush1.bf16.msra.mxu1 %v2479_v57  ;;  %1812 = vmatpush1.bf16.msra.mxu0 %v2482_v58  ;;  %v804_v12 = vpack.c.bf16 %v795_v3, %v795_v3  ;;  %v764_v16 = vadd.f32 %v763_v7, %v181_v61  ;;  %v2538_v55 = vld [vmem:[#allocation6 + $0x3b4] ss:$8 sps:$4 sm:$0xff]   ;;  %v2533_v58 = vld [vmem:[#allocation6 + $0x290] ss:$8 sps:$4 sm:$0xff]   ;;  %v2541_v60 = vld [vmem:[#allocation6 + $0x284] ss:$8 sps:$4 sm:$0xff]  }
 0x125   :  { %1776 = vmatprep.subr.bf16.mxu1 %v2487_v62  ;;  %1813 = vmatprep.subr.bf16.mxu0 %v2490_v63  ;;  %v765_v19 = vpop.f32.mrf.mxu0  ;;  %v778_v56 = vmax.f32 %v600_v52, 0.0  ;;  %v779_v57 = vmax.f32 %v602_v10, 0.0  ;;  %v2544_v15 = vld [vmem:[#allocation6 + $0x3a4] ss:$8 sps:$4 sm:$0xff]   ;;  %v2539_v25 = vld [vmem:[#allocation6 + $0x280] ss:$8 sps:$4 sm:$0xff]  }
 0x126   :  { %1837 = vmatprep.mubr.bf16.mxu0 %v804_v12  ;;  %v786_v20 = vmax.f32 %v764_v16, 0.0  ;;  %v766_v22 = vadd.f32 %v765_v19, %v185_v6  ;;  %v2542_v62 = vld [vmem:[#allocation6 + $0x3a0] ss:$8 sps:$4 sm:$0xff]   ;;  %v2547_v63 = vld [vmem:[#allocation6 + $0x394] ss:$8 sps:$4 sm:$0xff]  }
 0x127   :  { %v767_v11 = vpop.f32.mrf.mxu0  ;;  %v792_v61 = vmax.f32 %v778_v56, %v779_v57  ;;  %v2550_v1 = vld [vmem:[#allocation6 + $0x474] ss:$8 sps:$4 sm:$0xff]   ;;  %v2545_v3 = vld [vmem:[#allocation6 + $0x390] ss:$8 sps:$4 sm:$0xff]   ;;  %v2553_v7 = vld [vmem:[#allocation6 + $0x384] ss:$8 sps:$4 sm:$0xff]  }
 0x128   :  { %1777 = vmatpush1.bf16.msra.mxu1 %v2485_v8  ;;  %1814 = vmatpush1.bf16.msra.mxu0 %v2488_v9  ;;  %v787_v28 = vmax.f32 %v766_v22, 0.0  ;;  %v2548_v6 = vld [vmem:[#allocation6 + $0x470] ss:$8 sps:$4 sm:$0xff]   ;;  %v2556_v8 = vld [vmem:[#allocation6 + $0x464] ss:$8 sps:$4 sm:$0xff]  }
 0x129   :  { %1778 = vmatprep.subr.bf16.mxu1 %v2493_v17  ;;  %1815 = vmatprep.subr.bf16.mxu0 %v2496_v18  ;;  %v768_v30 = vpop.f32.mrf.mxu0  ;;  %v801_v2 = vpack.c.bf16 %v792_v61, %v792_v61  ;;  %v2551_v9 = vld [vmem:[#allocation6 + $0x380] ss:$8 sps:$4 sm:$0xff]   ;;  %v2559_v16 = vld [vmem:[#allocation6 + $0x454] ss:$8 sps:$4 sm:$0xff]   ;;  %v803_v17 = vpack.c.bf16 %v2838_v5, %v2838_v5  ;;  %v2557_v18 = vld [vmem:[#allocation6 + $0x450] ss:$8 sps:$4 sm:$0xff]  }
 0x12a   :  { %v2841_v32 = vmax.f32 %v786_v20, %v787_v28  ;;  %v2554_v12 = vld [vmem:[#allocation6 + $0x460] ss:$8 sps:$4 sm:$0xff]   ;;  %v2562_v19 = vld [vmem:[#allocation6 + $0x444] ss:$8 sps:$4 sm:$0xff]   ;;  %v2565_v22 = vld [vmem:[#allocation6 + $0x434] ss:$8 sps:$4 sm:$0xff]  }
 0x12b   :  { %v2560_v20 = vld [vmem:[#allocation6 + $0x440] ss:$8 sps:$4 sm:$0xff]   ;;  %v2563_v11 = vld [vmem:[#allocation6 + $0x430] ss:$8 sps:$4 sm:$0xff]   ;;  %v2574_v28 = vld [vmem:[#allocation6 + $0x404] ss:$8 sps:$4 sm:$0xff]  }
 0x12c   :  { %1779 = vmatpush1.bf16.msra.mxu1 %v2491_v23  ;;  %1816 = vmatpush1.bf16.msra.mxu0 %v2494_v26  ;;  %v2568_v23 = vld [vmem:[#allocation6 + $0x424] ss:$8 sps:$4 sm:$0xff]   ;;  %v2566_v26 = vld [vmem:[#allocation6 + $0x420] ss:$8 sps:$4 sm:$0xff]   ;;  %v2569_v5 = vld [vmem:[#allocation6 + $0x410] ss:$8 sps:$4 sm:$0xff]  }
 0x12d   :  { %1780 = vmatprep.subr.bf16.mxu1 %v2499_v14  ;;  %1817 = vmatprep.subr.bf16.mxu0 %v2502_v29  ;;  %v2572_v14 = vld [vmem:[#allocation6 + $0x400] ss:$8 sps:$4 sm:$0xff]   ;;  %v805_v29 = vpack.c.bf16 %v2841_v32, %v2841_v32  ;;  %v2575_v30 = vld [vmem:[#allocation7 + $0x78] sm:$0xff]   ;;  %v2585_v32 = vld [vmem:[#allocation7 + $0x50] sm:$0xff]  }
 0x130   :  { %1781 = vmatpush2.bf16.msra.mxu1 %v2497_v33  ;;  %1818 = vmatpush1.bf16.msra.mxu0 %v2500_v34  ;;  %v2576_v33 = vld [vmem:[#allocation7 + $0x38] sm:$0xff]   ;;  %v2577_v34 = vld [vmem:[#allocation7 + $0x70] sm:$0xff]  }
 0x131   :  { %1782 = vmatprep.subr.bf16.mxu1 %v2505_v35  ;;  %1819 = vmatprep.subr.bf16.mxu0 %v2508_v36  ;;  %v2578_v35 = vld [vmem:[#allocation7 + $0x30] sm:$0xff]   ;;  %v2579_v36 = vld [vmem:[#allocation7 + $0x68] sm:$0xff]  }
 0x134   :  { %1783 = vmatpush2.bf16.msra.mxu1 %v2503_v37  ;;  %1820 = vmatpush1.bf16.msra.mxu0 %v2506_v38  ;;  %v2580_v37 = vld [vmem:[#allocation7 + $0x28] sm:$0xff]   ;;  %v2581_v38 = vld [vmem:[#allocation7 + $0x60] sm:$0xff]  }
 0x135   :  { %1784 = vmatprep.subr.bf16.mxu1 %v2511_v39  ;;  %1821 = vmatprep.subr.bf16.mxu0 %v2514_v40  ;;  %v2582_v39 = vld [vmem:[#allocation7 + $0x20] sm:$0xff]   ;;  %v2583_v40 = vld [vmem:[#allocation7 + $0x58] sm:$0xff]  }
 0x138   :  { %1785 = vmatpush2.bf16.msra.mxu1 %v2509_v41  ;;  %1822 = vmatpush2.bf16.msra.mxu0 %v2512_v42  ;;  %v2584_v41 = vld [vmem:[#allocation7 + $0x18] sm:$0xff]   ;;  %v2586_v42 = vld [vmem:[#allocation7 + $0x10] sm:$0xff]  }
 0x139   :  { %1786 = vmatprep.subr.bf16.mxu1 %v2517_v21  ;;  %1823 = vmatprep.subr.bf16.mxu0 %v2520_v43  ;;  %v2587_v21 = vld [vmem:[#allocation7 + $0x48] sm:$0xff]  }
 0x13a   :  { %v2588_v43 = vld [vmem:[#allocation7 + $0x8] sm:$0xff]  }
 0x13c   :  { %1787 = vmatpush2.bf16.msra.mxu1 %v2515_v44  ;;  %1824 = vmatpush2.bf16.msra.mxu0 %v2518_v45  ;;  %v2589_v44 = vld [vmem:[#allocation7 + $0x40] sm:$0xff]  }
 0x13d   :  { %1788 = vmatprep.subr.bf16.mxu1 %v2523_v46  ;;  %1825 = vmatprep.subr.bf16.mxu0 %v2526_v47  ;;  %v2590_v45 = vld [vmem:[#allocation7] sm:$0xff]   ;;  %v950_v46 = vld [vmem:[%s2869_s4] sm:$0x3] }
 0x13e   :  { %v955_v48 = vrot.slane %v950_v46, %v2796_v4 }
 0x140   :  { %1789 = vmatpush2.bf16.msra.mxu1 %v2521_v49  ;;  %1826 = vmatpush2.bf16.msra.mxu0 %v2524_v50  ;;  %v959_v50 = vrot.slane %v950_v46, %v2800_v13 }
 0x141   :  { %1790 = vmatprep.subr.bf16.mxu1 %v2529_v51  ;;  %1827 = vmatprep.subr.bf16.mxu0 %v2532_v27 }
 0x144   :  { %1791 = vmatpush2.bf16.msra.mxu1 %v2527_v31  ;;  %1828 = vmatpush2.bf16.msra.mxu0 %v2530_v53 }
 0x145   :  { %1792 = vmatprep.subr.bf16.mxu1 %v2535_v54  ;;  %1829 = vmatprep.subr.bf16.mxu0 %v2538_v55 }
 0x148   :  { %1793 = vmatpush2.bf16.msra.mxu1 %v2533_v58  ;;  %1830 = vmatpush2.bf16.msra.mxu0 %v2536_v59 }
 0x149   :  { %1794 = vmatprep.subr.bf16.mxu1 %v2541_v60  ;;  %1831 = vmatprep.subr.bf16.mxu0 %v2544_v15 }
 0x14c   :  { %1795 = vmatpush2.bf16.msra.mxu1 %v2539_v25  ;;  %1832 = vmatpush2.bf16.msra.mxu0 %v2542_v62 }
 0x14d   :  { %1833 = vmatprep.subr.bf16.mxu0 %v2547_v63  ;;  %1846 = vmatprep.subr.bf16.mxu1 %v2550_v1 }
 0x14f   :  { %1797 = vmatmul.mubr.bf16.vlgmr.msra.gmra.mxu1 %v801_v2 }
 0x150   :  { %1834 = vmatpush2.bf16.msra.mxu0 %v2545_v3  ;;  %1847 = vmatpush1.bf16.msra.mxu1 %v2548_v6 }
 0x151   :  { %1835 = vmatprep.subr.bf16.mxu0 %v2553_v7  ;;  %1848 = vmatprep.subr.bf16.mxu1 %v2556_v8 }
 0x152   :  { %1878 = vmatprep.mubr.bf16.mxu1 %v2687_v0  ;;  %v2571_v0 = vld [vmem:[#allocation6 + $0x414] ss:$8 sps:$4 sm:$0xff]  }
 0x154   :  { %1836 = vmatpush2.bf16.msra.mxu0 %v2551_v9  ;;  %1849 = vmatpush1.bf16.msra.mxu1 %v2554_v12 }
 0x155   :  { %1850 = vmatprep.subr.bf16.mxu1 %v2559_v16  ;;  %2280 = vmatprep.subr.bf16.mxu0 %v2575_v30 }
 0x157   :  { %1838 = vmatmul.mubr.bf16.vlgmr.msra.gmra.mxu0 %v803_v17 }
 0x158   :  { %1851 = vmatpush1.bf16.msra.mxu1 %v2557_v18  ;;  %2281 = vmatpush3.bf16.msra.mxu0 %v2576_v33 }
 0x159   :  { %1852 = vmatprep.subr.bf16.mxu1 %v2562_v19  ;;  %2282 = vmatprep.subr.bf16.mxu0 %v2577_v34 }
 0x15c   :  { %1853 = vmatpush1.bf16.msra.mxu1 %v2560_v20  ;;  %2283 = vmatpush3.bf16.msra.mxu0 %v2578_v35  ;;  %v2263_v20 = vld [vmem:[%s2871_s6] ss:$0 sm:$0xff] }
 0x15d   :  { %1854 = vmatprep.subr.bf16.mxu1 %v2565_v22  ;;  %2284 = vmatprep.subr.bf16.mxu0 %v2579_v36 }
 0x160   :  { %1855 = vmatpush1.bf16.msra.mxu1 %v2563_v11  ;;  %2285 = vmatpush3.bf16.msra.mxu0 %v2580_v37 }
 0x161   :  { %1856 = vmatprep.subr.bf16.mxu1 %v2568_v23  ;;  %2286 = vmatprep.subr.bf16.mxu0 %v2581_v38 }
 0x164   :  { %1857 = vmatpush1.bf16.msra.mxu1 %v2566_v26  ;;  %2287 = vmatpush3.bf16.msra.mxu0 %v2582_v39 }
 0x165   :  { %1858 = vmatprep.subr.bf16.mxu1 %v2571_v0  ;;  %2288 = vmatprep.subr.bf16.mxu0 %v2583_v40 }
 0x168   :  { %1859 = vmatpush1.bf16.msra.mxu1 %v2569_v5  ;;  %2289 = vmatpush3.bf16.msra.mxu0 %v2584_v41 }
 0x169   :  { %1860 = vmatprep.subr.bf16.mxu1 %v2574_v28  ;;  %2290 = vmatprep.subr.bf16.mxu0 %v2585_v32 }
 0x16c   :  { %1861 = vmatpush1.bf16.msra.mxu1 %v2572_v14  ;;  %2291 = vmatpush3.bf16.msra.mxu0 %v2586_v42 }
 0x16d   :  { %2292 = vmatprep.subr.bf16.mxu0 %v2587_v21 }
 0x16f   :  { %1879 = vmatmul.mubr.bf16.vlgmr.msra.gmra.mxu1 %v805_v29 }
 0x170   :  { %2293 = vmatpush3.bf16.msra.mxu0 %v2588_v43 }
 0x171   :  { %2294 = vmatprep.subr.bf16.mxu0 %v2589_v44 }
 0x174   :  { %2295 = vmatpush3.bf16.msra.mxu0 %v2590_v45 }
 0x1cf   :  { %v1716_v47 = vpop.f32.mrf.mxu1 }
 0x1d0   :  { %v1717_v27 = vadd.f32 %v1716_v47, %v955_v48 }
 0x1d1   :  { %v1718_v24 = vpop.f32.mrf.mxu1 }
 0x1d2   :  { %v1719_v10 = vadd.f32 %v1718_v24, %v959_v50 }
 0x1d3   :  { %v1720_v49 = vpop.f32.mrf.mxu1 }
 0x1d5   :  { %v1721_v51 = vpop.f32.mrf.mxu1 }
 0x1d7   :  { %v1757_v52 = vpop.f32.mrf.mxu0 }
 0x1d8   :  { %v1758_v31 = vadd.f32 %v1757_v52, %v1717_v27 }
 0x1d9   :  { %v1759_v53 = vpop.f32.mrf.mxu0 }
 0x1da   :  { %v1760_v54 = vadd.f32 %v1759_v53, %v1719_v10 }
 0x1db   :  { %v1761_v55 = vpop.f32.mrf.mxu0 }
 0x1dd   :  { %v1762_v56 = vpop.f32.mrf.mxu0 }
 0x20f   :  { %v1798_v57 = vpop.f32.mrf.mxu1 }
 0x210   :  { %v1799_v62 = vadd.f32 %v1798_v57, %v1758_v31 }
 0x211   :  { %v1800_v58 = vpop.f32.mrf.mxu1 }
 0x212   :  { %v1801_v63 = vadd.f32 %v1800_v58, %v1760_v54 }
 0x213   :  { %v1802_v59 = vpop.f32.mrf.mxu1 }
 0x215   :  { %v1803_v60 = vpop.f32.mrf.mxu1 }
 0x217   :  { %v1839_v15 = vpop.f32.mrf.mxu0 }
 0x218   :  { %v1840_v13 = vadd.f32 %v1839_v15, %v1799_v62 }
 0x219   :  { %v1841_v61 = vpop.f32.mrf.mxu0 }
 0x21a   :  { %v1842_v2 = vadd.f32 %v1841_v61, %v1801_v63 }
 0x21b   :  { %v1843_v25 = vpop.f32.mrf.mxu0 }
 0x21d   :  { %v1844_v4 = vpop.f32.mrf.mxu0 }
 0x22f   :  { %v1880_v1 = vpop.f32.mrf.mxu1 }
 0x230   :  { %v1881_v3 = vadd.f32 %v1880_v1, %v1840_v13 }
 0x231   :  { %v1882_v6 = vpop.f32.mrf.mxu1 }
 0x232   :  { %v1883_v7 = vadd.f32 %v1882_v6, %v1842_v2  ;;  %v1887_v8 = vmax.f32 %v1881_v3, 0.0 }
 0x233   :  { %v1884_v9 = vpop.f32.mrf.mxu1 }
 0x234   :  { %v1888_v12 = vmax.f32 %v1883_v7, 0.0  ;;  %v1889_v18 = vpack.c.bf16 %v1887_v8, %v1887_v8 }
 0x235   :  { %v1885_v16 = vpop.f32.mrf.mxu1 }
 0x236   :  { %v1890_v17 = vpack.c.bf16 %v1888_v12, %v1888_v12 }
 0x238   :  { %2058 = vmatprep.mubr.bf16.mxu0 %v1890_v17 }
 0x239   :  { %2059 = vmatmul.mubr.bf16.vlgmr.msra.gmra.mxu0 %v1889_v18 }
 0x2f9   :  { %v2296_v19 = vpop.f32.mrf.mxu0 }
 0x2fb   :  { %v2297_v22 = vpop.f32.mrf.mxu0 }
 0x2fc   :  { %v2298_v11 = vadd.f32 %v2297_v22, %v2296_v19 }
 0x2fd   :  { %v2299_v23 = vpop.f32.mrf.mxu0 }
 0x2fe   :  { %v2061_v26 = vadd.f32 %v2298_v11, %v2263_v20 }
 0x2ff   :  { %v2300_v0 = vpop.f32.mrf.mxu0 }
 0x300   :  { %2066 = vst [vmem:[%s2872_s7] sm:$0xff] %v2061_v26 }
 0x301   :  { %2071 = vsyncpa [#allocation3], 1 }
 0x302   :  { %2072 = vsyncpa [#allocation5], 1 }
 0x303   :  { %2073 = vsyncpa [#allocation8], 1 }

</bundles_post_ra>
